<compile_context>
chip_gen: v5e
topology: v5e:2x2
jax: 0.10.0
libtpu: 0.0.40
codegen_flags: <defaults>
</compile_context>

<pallas_src>
import jax
import jax.numpy as jnp
import numpy as np
from jax.experimental import pallas as pl
from jax.experimental.pallas import tpu as pltpu


_NORM_MEAN = np.array([0.485, 0.456, 0.406], dtype=np.float32)
_NORM_STD = np.array([0.229, 0.224, 0.225], dtype=np.float32)


def _round_up(x: int, m: int) -> int:
    return (x + m - 1) // m * m


def _normalize_kernel(x_ref, scale_ref, offset_ref, o_ref):
    # x_ref: (ROW_TILE, COL_TILE) image data (rows = flattened N*C, cols = H*W)
    # scale_ref / offset_ref: (ROW_TILE, 1) per-row affine constants
    #   scale = 1/std[c], offset = -mean[c]/std[c], with c = row % 3.
    # Single fused multiply-add; the (ROW_TILE, 1) operands broadcast along lanes.
    o_ref[...] = x_ref[...] * scale_ref[...] + offset_ref[...]


def normalize(img: jax.Array) -> jax.Array:
    """img: (N, 3, H, W) float NCHW. Returns (img - mean) / std."""
    N, C, H, W = img.shape
    assert C == 3, "Normalizer expects 3 channels (RGB)"
    rows, cols = N * C, H * W
    itemsize = jnp.dtype(img.dtype).itemsize

    # ---- tile sizing: ~2 MiB blocks, (8,128)-aligned; Pallas masks edge blocks ----
    row_tile = min(_round_up(rows, 8), 256)                       # multiple of 8
    target_bytes = 2 * 1024 * 1024
    col_budget = max(128, (target_bytes // (row_tile * itemsize)) // 128 * 128)
    col_tile = min(_round_up(cols, 128), col_budget)              # multiple of 128

    grid = (pl.cdiv(rows, row_tile), pl.cdiv(cols, col_tile))

    # ---- lane-dense 2D view (free reshape of a contiguous NCHW tensor) ----
    x = img.reshape(rows, cols)

    # ---- tiny per-row affine constants (a few bytes/row, no broadcast slabs) ----
    ch = np.arange(rows) % 3          # row r of the (N*C, H*W) view is channel r % 3
    scale = jnp.asarray((1.0 / _NORM_STD)[ch].reshape(rows, 1), dtype=img.dtype)
    offset = jnp.asarray((-_NORM_MEAN / _NORM_STD)[ch].reshape(rows, 1), dtype=img.dtype)

    out = pl.pallas_call(
        _normalize_kernel,
        out_shape=jax.ShapeDtypeStruct((rows, cols), img.dtype),
        grid=grid,
        in_specs=[
            pl.BlockSpec((row_tile, col_tile), lambda i, j: (i, j)),
            pl.BlockSpec((row_tile, 1), lambda i, j: (i, 0)),
            pl.BlockSpec((row_tile, 1), lambda i, j: (i, 0)),
        ],
        out_specs=pl.BlockSpec((row_tile, col_tile), lambda i, j: (i, j)),
        compiler_params=pltpu.CompilerParams(
            dimension_semantics=("parallel", "parallel"),
        ),
    )(x, scale, offset)

    return out.reshape(N, C, H, W)


if __name__ == "__main__":
    key = jax.random.PRNGKey(0)
    # Small NCHW image batch, values in [0, 1] like a typical image tensor.
    img = jax.random.uniform(key, (2, 3, 16, 16), dtype=jnp.float32)

    out = normalize(img)
    out = jax.block_until_ready(out)

    # Reference check in plain JAX (same semantics as the PyTorch module).
    mean = jnp.array([0.485, 0.456, 0.406], dtype=jnp.float32).reshape(1, 3, 1, 1)
    std = jnp.array([0.229, 0.224, 0.225], dtype=jnp.float32).reshape(1, 3, 1, 1)
    ref = (img - mean) / std
    assert jnp.allclose(out, ref, atol=1e-5, rtol=1e-5), "mismatch vs reference"

    print("KERNEL_OK")
</pallas_src>

<mosaic_0001>
module attributes {stable_mosaic.version = 11 : i64} {
  func.func @_normalize_kernel(%arg0: i32, %arg1: i32, %arg2: memref<8x256xf32, #tpu.memory_space<vmem>>, %arg3: memref<8x1xf32, #tpu.memory_space<vmem>>, %arg4: memref<8x1xf32, #tpu.memory_space<vmem>>, %arg5: memref<8x256xf32, #tpu.memory_space<vmem>>) attributes {dimension_semantics = [#tpu.dimension_semantics<parallel>, #tpu.dimension_semantics<parallel>], iteration_bounds = array<i64: 1, 1>, scalar_prefetch = 0 : i64, scratch_operands = 0 : i64, tpu.core_type = #tpu.core_type<tc>, window_params = [{transform_indices = @transform_0, window_bounds = array<i64: 8, 256>}, {transform_indices = @transform_1, window_bounds = array<i64: 8, 1>}, {transform_indices = @transform_2, window_bounds = array<i64: 8, 1>}, {transform_indices = @transform_3, window_bounds = array<i64: 8, 256>}]} {
    %c0 = arith.constant 0 : index
    %c0_0 = arith.constant 0 : index
    %0 = vector.load %arg2[%c0, %c0_0] : memref<8x256xf32, #tpu.memory_space<vmem>>, vector<8x256xf32>
    %c0_1 = arith.constant 0 : index
    %c0_2 = arith.constant 0 : index
    %1 = vector.load %arg3[%c0_1, %c0_2] : memref<8x1xf32, #tpu.memory_space<vmem>>, vector<8x1xf32>
    %2 = vector.broadcast %1 : vector<8x1xf32> to vector<8x256xf32>
    %3 = arith.mulf %0, %2 : vector<8x256xf32>
    %c0_3 = arith.constant 0 : index
    %c0_4 = arith.constant 0 : index
    %4 = vector.load %arg4[%c0_3, %c0_4] : memref<8x1xf32, #tpu.memory_space<vmem>>, vector<8x1xf32>
    %5 = vector.broadcast %4 : vector<8x1xf32> to vector<8x256xf32>
    %6 = arith.addf %3, %5 : vector<8x256xf32>
    %c0_5 = arith.constant 0 : index
    %c0_6 = arith.constant 0 : index
    %7 = vector.load %arg5[%c0_5, %c0_6] : memref<8x256xf32, #tpu.memory_space<vmem>>, vector<8x256xf32>
    tpu.vector_store %arg5[%c0_5, %c0_6], %6 {strides = array<i32>} : memref<8x256xf32, #tpu.memory_space<vmem>>, vector<8x256xf32>,
    return
  }
  func.func @transform_0(%arg0: i32, %arg1: i32) -> (i32, i32) {
    %c0_i32 = arith.constant 0 : i32
    return %arg0, %arg1 : i32, i32
  }
  func.func @transform_1(%arg0: i32, %arg1: i32) -> (i32, i32) {
    %c0_i32 = arith.constant 0 : i32
    %c0_i32_0 = arith.constant 0 : i32
    return %arg0, %c0_i32 : i32, i32
  }
  func.func @transform_2(%arg0: i32, %arg1: i32) -> (i32, i32) {
    %c0_i32 = arith.constant 0 : i32
    %c0_i32_0 = arith.constant 0 : i32
    return %arg0, %c0_i32 : i32, i32
  }
  func.func @transform_3(%arg0: i32, %arg1: i32) -> (i32, i32) {
    %c0_i32 = arith.constant 0 : i32
    return %arg0, %arg1 : i32, i32
  }
}

</mosaic_0001>

<bundles_post_ra>
// kernel: tpu_custom_call.1
= control target key start
LH: loop header
LB: loop body
LE: loop exit
PB: predicated region body
PF: predicated region fallthrough
CT: control target
= control target key end

     0   :  { %s117_s0 = inlined_call_operand.vmem [shape: f32[6,256], index: 0, kind: input, shape index: {}]   ;;  %s118_s1 = inlined_call_operand.vmem [shape: f32[6,1], index: 1, kind: input, shape index: {}]   ;;  %s119_s2 = inlined_call_operand.vmem [shape: f32[6,1], index: 2, kind: input, shape index: {}]   ;;  %s120_s3 = inlined_call_operand.hbm [shape: f32[6,256], index: 3, kind: output, shape index: {}]  }
   0x1   :  { %v17_v0 = vld [vmem:[%s118_s1] sm:$0xff] }
   0x2   :  { %8 = vsyncpa [#allocation3], 0  ;;  %v80_v1 = vmov 0   ;;  %v25_v2 = vld [vmem:[%s119_s2] sm:$0xff]  ;;  %v16_v5 = vld [vmem:[%s117_s0 + $0x8] sm:$0xff]  ;;  %s81_s1 = smov [#allocation2]  }
   0x3   :  { %53 = vset.pattern.permute.xlu0 %v80_v1  ;;  %v15_v4 = vld [vmem:[%s117_s0] sm:$0xff]  ;;  %s40_s20 = sshll.u32 %s81_s1, 4  ;;  %s42_s23 = sshll.u32 %s120_s3, 4  ;;  %s41_s20 = int_to_ptr.vmem [resolvable:$true] %s40_s20  ;;  %s43_s23 = int_to_ptr.hbm [resolvable:$true] %s42_s23 }
   0x4   :  { %20 = vperm.xlu0 %53, %v17_v0  }
   0xc   :  { %28 = vperm.xlu0 %53, %v25_v2  }
  0x76   :  { %v21_v3 = vpop.permute.xlu0 %20 }
  0x77   :  { %v23_v6 = vmul.f32 %v21_v3, %v15_v4  ;;  %v24_v7 = vmul.f32 %v21_v3, %v16_v5 }
  0x7e   :  { %v29_v8 = vpop.permute.xlu0 %28 }
  0x7f   :  { %v31_v9 = vadd.f32 %v29_v8, %v23_v6  ;;  %v32_v10 = vadd.f32 %v29_v8, %v24_v7 }
  0x81   :  { %33 = vst [vmem:[#allocation2] sm:$0xff] %v31_v9 }
  0x82   :  { %34 = vst [vmem:[#allocation2 + $0x8] sm:$0xff] %v32_v10 }
  0x83   :  { %45 = dma.vmem_to_hbm [thread:$0]  %s41_s20, 256, %s43_s23, [#allocation3]  }
  0x84   :  { %78 = dma.done.wait [#allocation3], 256  }
  0x85   :  { %79 = vsyncadd [#allocation3], 4294967040 }
  0x86   :  { %50 = vsyncpa [#allocation3], 1 }

</bundles_post_ra>
